<compile_context>
chip_gen: v7x
topology: tpu7x:2x2x1
jax: 0.10.0
libtpu: 0.0.40
codegen_flags: <defaults>
</compile_context>

<pallas_src>
import functools
import math

import jax
import jax.numpy as jnp
from jax.experimental import pallas as pl
from jax.experimental.pallas import tpu as pltpu


def _round_up(n, m):
    return ((n + m - 1) // m) * m


# ---------------------------------------------------------------------------
# Kernels
# ---------------------------------------------------------------------------

def _mlp_tile(x_ref, w_ref, b_ref, *, n_states):
    """Fused 3-layer MLP body on one (tm, n_states) activation tile.

    x_ref: (tm, n_states) f32   batch tile (no column padding)
    w_ref: (3, H, H)            weight slab (f32 or bf16), VMEM-resident
    b_ref: (3, 1, H) f32        bias slab
    returns (tm, H) f32 Q tile (columns >= n_actions are exactly 0).
    """
    wd = w_ref.dtype                      # f32 or bf16 weights; f32 accumulate
    x = x_ref[...]                        # (tm, n_states)

    # Layer 1: (tm, n_states) @ (n_states, H) -- static slice of the resident
    # slab is a cheap VMEM view; the MXU handles the tiny contracting dim.
    h = jnp.dot(x.astype(wd), w_ref[0, :n_states, :],
                preferred_element_type=jnp.float32) + b_ref[0]
    h = jnp.maximum(h, 0.0)

    # Layer 2: (tm, H) @ (H, H)
    h = jnp.dot(h.astype(wd), w_ref[1],
                preferred_element_type=jnp.float32) + b_ref[1]
    h = jnp.maximum(h, 0.0)

    # Layer 3: (tm, H) @ (H, H)  (output columns padded n_actions -> H)
    q = jnp.dot(h.astype(wd), w_ref[2],
                preferred_element_type=jnp.float32) + b_ref[2]
    return q


def dqn_q_kernel(x_ref, w_ref, b_ref, q_ref, *, n_states):
    """Training-path kernel: lane-dense (tm, H) f32 Q tile."""
    q = _mlp_tile(x_ref, w_ref, b_ref, n_states=n_states)
    q_ref[...] = q.astype(q_ref.dtype)


def dqn_act_kernel(x_ref, w_ref, b_ref, a_ref, *, n_states, n_actions):
    """act()-path kernel: fused greedy argmax -> (tm, 1) int32 actions.

    Uses explicit VPU compare/select over the (static, tiny) n_actions columns
    instead of a cross-lane argmax, and skips the full Q writeback entirely.
    """
    q = _mlp_tile(x_ref, w_ref, b_ref, n_states=n_states)
    best_v = q[:, 0:1]
    best_i = jnp.zeros((q.shape[0], 1), jnp.int32)
    for a in range(1, n_actions):
        v = q[:, a:a + 1]
        take = v > best_v
        best_v = jnp.where(take, v, best_v)
        best_i = jnp.where(take, jnp.int32(a), best_i)
    a_ref[...] = best_i


# ---------------------------------------------------------------------------
# Wrappers
# ---------------------------------------------------------------------------

def _tile_batch(B, max_tm):
    """Pick (tm, B_pad): whole batch in one tile when it fits; otherwise cap
    the tile at max_tm, which automatically leaves >= 2 'parallel' grid steps
    (megacore split on v7x) for large batches."""
    B8 = _round_up(max(B, 1), 8)
    max_tm = _round_up(max(max_tm, 8), 8)
    tm = B8 if B8 <= max_tm else max_tm
    B_pad = _round_up(B8, tm)
    return tm, B_pad


def _common_specs(tm, n_states, hidden):
    # TODO(synk): optionally pipeline_mode=pl.Buffered(1) on the resident
    # weight/bias specs to drop their never-refetched second pipeline buffer
    # (saves ~192 KiB f32 / 96 KiB bf16 of VMEM headroom on v7x).
    return [
        # streamed, double-buffered activation tiles (no column padding)
        pl.BlockSpec((tm, n_states), lambda i: (i, 0)),
        # weights/biases: constant block index -> fetched once, VMEM-resident
        pl.BlockSpec((3, hidden, hidden), lambda i: (0, 0, 0)),
        pl.BlockSpec((3, 1, hidden), lambda i: (0, 0, 0)),
    ]


def _cost(B_pad, n_states, hidden, out_bytes, x_pad, w_slab, b_slab):
    flops = 2 * B_pad * hidden * (n_states + 2 * hidden)
    bytes_accessed = (x_pad.size * x_pad.dtype.itemsize
                      + out_bytes
                      + w_slab.size * w_slab.dtype.itemsize
                      + b_slab.size * b_slab.dtype.itemsize)
    return pl.CostEstimate(flops=flops, transcendentals=0,
                           bytes_accessed=bytes_accessed)


def dqn_forward(x, w_slab, b_slab, *, n_actions, max_tm=1024):
    """x: (B, n_states) f32. Returns (B, n_actions) f32 Q-values."""
    B, n_states = x.shape
    hidden = w_slab.shape[-1]
    tm, B_pad = _tile_batch(B, max_tm)

    # Pad only the batch dim; the tiny n_states column stays un-inflated.
    x_pad = x if B_pad == B else jnp.zeros((B_pad, n_states), x.dtype).at[:B].set(x)

    q_pad = pl.pallas_call(
        functools.partial(dqn_q_kernel, n_states=n_states),
        out_shape=jax.ShapeDtypeStruct((B_pad, hidden), jnp.float32),
        grid_spec=pltpu.PrefetchScalarGridSpec(
            num_scalar_prefetch=0,
            grid=(B_pad // tm,),
            in_specs=_common_specs(tm, n_states, hidden),
            out_specs=pl.BlockSpec((tm, hidden), lambda i: (i, 0)),
        ),
        compiler_params=pltpu.CompilerParams(
            dimension_semantics=("parallel",)),       # megacore split on v7x
        cost_estimate=_cost(B_pad, n_states, hidden, B_pad * hidden * 4,
                            x_pad, w_slab, b_slab),
    )(x_pad, w_slab, b_slab)

    return q_pad[:B, :n_actions]


def dqn_act(x, w_slab, b_slab, *, n_actions, max_tm=1024):
    """x: (B, n_states) f32. Returns (B,) int32 greedy actions (fused argmax)."""
    B, n_states = x.shape
    hidden = w_slab.shape[-1]
    tm, B_pad = _tile_batch(B, max_tm)

    x_pad = x if B_pad == B else jnp.zeros((B_pad, n_states), x.dtype).at[:B].set(x)

    a_pad = pl.pallas_call(
        functools.partial(dqn_act_kernel, n_states=n_states, n_actions=n_actions),
        out_shape=jax.ShapeDtypeStruct((B_pad, 1), jnp.int32),
        grid_spec=pltpu.PrefetchScalarGridSpec(
            num_scalar_prefetch=0,
            grid=(B_pad // tm,),
            in_specs=_common_specs(tm, n_states, hidden),
            out_specs=pl.BlockSpec((tm, 1), lambda i: (i, 0)),
        ),
        compiler_params=pltpu.CompilerParams(
            dimension_semantics=("parallel",)),
        cost_estimate=_cost(B_pad, n_states, hidden, B_pad * 4,
                            x_pad, w_slab, b_slab),
    )(x_pad, w_slab, b_slab)

    return a_pad[:B, 0]


# ---------------------------------------------------------------------------
# Params
# ---------------------------------------------------------------------------

def init_dqn_params(key, n_states=4, n_actions=2, hidden=128):
    """PyTorch nn.Linear-style init U(-1/sqrt(fan_in), 1/sqrt(fan_in));
    weights stored transposed, i.e. shape (in_features, out_features)."""
    ks = jax.random.split(key, 6)

    def linear(kw, kb, fan_in, fan_out):
        bound = 1.0 / math.sqrt(fan_in)
        w = jax.random.uniform(kw, (fan_in, fan_out), jnp.float32, -bound, bound)
        b = jax.random.uniform(kb, (1, fan_out), jnp.float32, -bound, bound)
        return w, b

    w1, b1 = linear(ks[0], ks[1], n_states, hidden)
    w2, b2 = linear(ks[2], ks[3], hidden, hidden)
    w3, b3 = linear(ks[4], ks[5], hidden, n_actions)
    return {"w1": w1, "b1": b1, "w2": w2, "b2": b2, "w3": w3, "b3": b3}


def pack_dqn_params(p, hidden=128, weight_dtype=jnp.bfloat16):
    """Pack the 6 Linear params into 2 tile-aligned slabs (call ONCE, reuse).

    Default weight_dtype=bfloat16 halves the resident weight slab and hits the
    bf16-native MXU path (f32 accumulation in-kernel); biases/activations stay
    f32.  Pass weight_dtype=jnp.float32 for bit-exact checks.  Do NOT use int8
    here: v7x's MXU has no int path.
    """
    n_states = p["w1"].shape[0]
    n_actions = p["w3"].shape[1]
    assert n_states <= hidden and n_actions <= hidden

    def as_row(b, width):
        row = jnp.asarray(b, jnp.float32).reshape(1, -1)
        return jnp.zeros((1, width), jnp.float32).at[:, :row.shape[1]].set(row)

    w1 = jnp.zeros((hidden, hidden), weight_dtype).at[:n_states, :].set(
        p["w1"].astype(weight_dtype))
    w2 = jnp.asarray(p["w2"], jnp.float32).astype(weight_dtype)
    w3 = jnp.zeros((hidden, hidden), weight_dtype).at[:, :n_actions].set(
        p["w3"].astype(weight_dtype))
    w_slab = jnp.stack([w1, w2, w3])                         # (3, H, H)

    b_slab = jnp.stack([as_row(p["b1"], hidden),
                        as_row(p["b2"], hidden),
                        as_row(p["b3"], hidden)])            # (3, 1, H) f32
    return w_slab, b_slab


# ---------------------------------------------------------------------------
# Pure-JAX references
# ---------------------------------------------------------------------------

def dqn_reference(x, p):
    h = jnp.maximum(x @ p["w1"] + p["b1"], 0.0)
    h = jnp.maximum(h @ p["w2"] + p["b2"], 0.0)
    return h @ p["w3"] + p["b3"]


def dqn_reference_bf16w(x, p):
    """Mirrors the kernel's bf16-weight / f32-accumulate arithmetic."""
    def dot(a, w):
        return jnp.dot(a.astype(jnp.bfloat16), w.astype(jnp.bfloat16),
                       preferred_element_type=jnp.float32)
    h = jnp.maximum(dot(x, p["w1"]) + p["b1"], 0.0)
    h = jnp.maximum(dot(h, p["w2"]) + p["b2"], 0.0)
    return dot(h, p["w3"]) + p["b3"]


# ---------------------------------------------------------------------------
# Demo / checks
# ---------------------------------------------------------------------------

if __name__ == "__main__":
    key = jax.random.PRNGKey(0)
    k_params, k_x, k_x2 = jax.random.split(key, 3)

    n_states, n_actions, hidden = 4, 2, 128
    batch = 32

    params = init_dqn_params(k_params, n_states, n_actions, hidden)
    w_f32, b_f32 = pack_dqn_params(params, hidden=hidden,
                                   weight_dtype=jnp.float32)  # exact-check slab
    w_bf16, b_bf16 = pack_dqn_params(params, hidden=hidden)    # perf default

    x = jax.random.normal(k_x, (batch, n_states), jnp.float32)
    ref = dqn_reference(x, params)

    # 1) f32 weights, single-tile grid (whole batch in one tile).
    q = jax.block_until_ready(dqn_forward(x, w_f32, b_f32, n_actions=n_actions))
    assert q.shape == (batch, n_actions)
    assert jnp.allclose(q, ref, atol=1e-4, rtol=1e-4), "f32 mismatch vs reference"

    # 2) multi-step grid path (force small tm) — exercises batch streaming.
    q2 = jax.block_until_ready(
        dqn_forward(x, w_f32, b_f32, n_actions=n_actions, max_tm=16))
    assert jnp.allclose(q2, ref, atol=1e-4, rtol=1e-4), "tiled mismatch vs reference"

    # 3) bf16-weight path (perf default) vs a matching bf16-weight reference.
    q_bf = jax.block_until_ready(
        dqn_forward(x, w_bf16, b_bf16, n_actions=n_actions))
    ref_bf = dqn_reference_bf16w(x, params)
    assert jnp.allclose(q_bf, ref_bf, atol=1e-2, rtol=1e-2), "bf16 mismatch"

    # 4) fused greedy-action kernel on an act()-style tiny, odd-sized batch.
    x_small = jax.random.normal(k_x2, (3, n_states), jnp.float32)
    acts = jax.block_until_ready(
        dqn_act(x_small, w_f32, b_f32, n_actions=n_actions))
    ref_acts = jnp.argmax(dqn_reference(x_small, params), axis=-1).astype(jnp.int32)
    assert acts.shape == (3,)
    assert jnp.array_equal(acts, ref_acts), "fused argmax mismatch"

    print("KERNEL_OK")
</pallas_src>

<mosaic_0001>
module attributes {stable_mosaic.version = 11 : i64} {
  func.func @dqn_q_kernel(%arg0: i32, %arg1: memref<32x4xf32, #tpu.memory_space<vmem>>, %arg2: memref<3x128x128xf32, #tpu.memory_space<vmem>>, %arg3: memref<3x1x128xf32, #tpu.memory_space<vmem>>, %arg4: memref<32x128xf32, #tpu.memory_space<vmem>>) attributes {dimension_semantics = [#tpu.dimension_semantics<parallel>], iteration_bounds = array<i64: 1>, scalar_prefetch = 0 : i64, scratch_operands = 0 : i64, tpu.core_type = #tpu.core_type<tc>, window_params = [{transform_indices = @transform_0, window_bounds = array<i64: 32, 4>}, {pipeline_mode = #tpu.pipeline_mode<synchronous>, transform_indices = @transform_1, window_bounds = array<i64: 3, 128, 128>}, {pipeline_mode = #tpu.pipeline_mode<synchronous>, transform_indices = @transform_2, window_bounds = array<i64: 3, 1, 128>}, {transform_indices = @transform_3, window_bounds = array<i64: 32, 128>}]} {
    %c0 = arith.constant 0 : index
    %c0_0 = arith.constant 0 : index
    %0 = vector.load %arg1[%c0, %c0_0] : memref<32x4xf32, #tpu.memory_space<vmem>>, vector<32x4xf32>
    %c0_1 = arith.constant 0 : index
    %c0_2 = arith.constant 0 : index
    %c0_3 = arith.constant 0 : index
    %1 = vector.load %arg2[%c0_1, %c0_2, %c0_3] : memref<3x128x128xf32, #tpu.memory_space<vmem>>, vector<1x4x128xf32>
    %2 = vector.shape_cast %1 : vector<1x4x128xf32> to vector<4x128xf32>
    %cst = arith.constant dense<0.000000e+00> : vector<32x128xf32>
    %3 = tpu.matmul %0, %2, %cst {dimension_numbers = #tpu.dot_dimension_numbers<[1], [0], [0], [1], [0, 0, 1, 1], [], []>} : vector<32x4xf32>, vector<4x128xf32>, vector<32x128xf32> -> vector<32x128xf32>
    %c0_4 = arith.constant 0 : index
    %c0_5 = arith.constant 0 : index
    %c0_6 = arith.constant 0 : index
    %4 = vector.load %arg3[%c0_4, %c0_5, %c0_6] : memref<3x1x128xf32, #tpu.memory_space<vmem>>, vector<1x1x128xf32>
    %5 = vector.shape_cast %4 : vector<1x1x128xf32> to vector<1x128xf32>
    %6 = vector.broadcast %5 : vector<1x128xf32> to vector<32x128xf32>
    %7 = arith.addf %3, %6 : vector<32x128xf32>
    %cst_7 = arith.constant 0.000000e+00 : f32
    %8 = vector.broadcast %cst_7 : f32 to vector<32x128xf32>
    %9 = arith.maximumf %7, %8 : vector<32x128xf32>
    %c1 = arith.constant 1 : index
    %c0_8 = arith.constant 0 : index
    %c0_9 = arith.constant 0 : index
    %10 = vector.load %arg2[%c1, %c0_8, %c0_9] : memref<3x128x128xf32, #tpu.memory_space<vmem>>, vector<1x128x128xf32>
    %11 = vector.shape_cast %10 : vector<1x128x128xf32> to vector<128x128xf32>
    %cst_10 = arith.constant dense<0.000000e+00> : vector<32x128xf32>
    %12 = tpu.matmul %9, %11, %cst_10 {dimension_numbers = #tpu.dot_dimension_numbers<[1], [0], [0], [1], [0, 0, 1, 1], [], []>} : vector<32x128xf32>, vector<128x128xf32>, vector<32x128xf32> -> vector<32x128xf32>
    %c1_11 = arith.constant 1 : index
    %c0_12 = arith.constant 0 : index
    %c0_13 = arith.constant 0 : index
    %13 = vector.load %arg3[%c1_11, %c0_12, %c0_13] : memref<3x1x128xf32, #tpu.memory_space<vmem>>, vector<1x1x128xf32>
    %14 = vector.shape_cast %13 : vector<1x1x128xf32> to vector<1x128xf32>
    %15 = vector.broadcast %14 : vector<1x128xf32> to vector<32x128xf32>
    %16 = arith.addf %12, %15 : vector<32x128xf32>
    %cst_14 = arith.constant 0.000000e+00 : f32
    %17 = vector.broadcast %cst_14 : f32 to vector<32x128xf32>
    %18 = arith.maximumf %16, %17 : vector<32x128xf32>
    %c2 = arith.constant 2 : index
    %c0_15 = arith.constant 0 : index
    %c0_16 = arith.constant 0 : index
    %19 = vector.load %arg2[%c2, %c0_15, %c0_16] : memref<3x128x128xf32, #tpu.memory_space<vmem>>, vector<1x128x128xf32>
    %20 = vector.shape_cast %19 : vector<1x128x128xf32> to vector<128x128xf32>
    %cst_17 = arith.constant dense<0.000000e+00> : vector<32x128xf32>
    %21 = tpu.matmul %18, %20, %cst_17 {dimension_numbers = #tpu.dot_dimension_numbers<[1], [0], [0], [1], [0, 0, 1, 1], [], []>} : vector<32x128xf32>, vector<128x128xf32>, vector<32x128xf32> -> vector<32x128xf32>
    %c2_18 = arith.constant 2 : index
    %c0_19 = arith.constant 0 : index
    %c0_20 = arith.constant 0 : index
    %22 = vector.load %arg3[%c2_18, %c0_19, %c0_20] : memref<3x1x128xf32, #tpu.memory_space<vmem>>, vector<1x1x128xf32>
    %23 = vector.shape_cast %22 : vector<1x1x128xf32> to vector<1x128xf32>
    %24 = vector.broadcast %23 : vector<1x128xf32> to vector<32x128xf32>
    %25 = arith.addf %21, %24 : vector<32x128xf32>
    %c0_21 = arith.constant 0 : index
    %c0_22 = arith.constant 0 : index
    %26 = vector.load %arg4[%c0_21, %c0_22] : memref<32x128xf32, #tpu.memory_space<vmem>>, vector<32x128xf32>
    tpu.vector_store %arg4[%c0_21, %c0_22], %25 {strides = array<i32>} : memref<32x128xf32, #tpu.memory_space<vmem>>, vector<32x128xf32>,
    return
  }
  func.func @transform_0(%arg0: i32) -> (i32, i32) {
    %c0_i32 = arith.constant 0 : i32
    %c0_i32_0 = arith.constant 0 : i32
    return %arg0, %c0_i32 : i32, i32
  }
  func.func @transform_1(%arg0: i32) -> (i32, i32, i32) {
    %c0_i32 = arith.constant 0 : i32
    %c0_i32_0 = arith.constant 0 : i32
    %c0_i32_1 = arith.constant 0 : i32
    %c0_i32_2 = arith.constant 0 : i32
    return %c0_i32, %c0_i32_0, %c0_i32_1 : i32, i32, i32
  }
  func.func @transform_2(%arg0: i32) -> (i32, i32, i32) {
    %c0_i32 = arith.constant 0 : i32
    %c0_i32_0 = arith.constant 0 : i32
    %c0_i32_1 = arith.constant 0 : i32
    %c0_i32_2 = arith.constant 0 : i32
    return %c0_i32, %c0_i32_0, %c0_i32_1 : i32, i32, i32
  }
  func.func @transform_3(%arg0: i32) -> (i32, i32) {
    %c0_i32 = arith.constant 0 : i32
    %c0_i32_0 = arith.constant 0 : i32
    return %arg0, %c0_i32 : i32, i32
  }
}

</mosaic_0001>

<bundles_post_ra>
// kernel: tpu_custom_call.1
= control target key start
LH: loop header
LB: loop body
LE: loop exit
PB: predicated region body
PF: predicated region fallthrough
CT: control target
= control target key end

     0   :  { %8 = vsyncpa [#allocation3], 0  ;;  %s726_s0 = inlined_call_operand.vmem [shape: f32[32,4], index: 0, kind: input, shape index: {}]   ;;  %s727_s1 = inlined_call_operand.hbm [shape: f32[3,128,128], index: 1, kind: input, shape index: {}]   ;;  %s728_s2 = inlined_call_operand.vmem [shape: f32[3,1,128], index: 2, kind: input, shape index: {}]   ;;  %s729_s3 = inlined_call_operand.hbm [shape: f32[32,128], index: 3, kind: output, shape index: {}]  }
   0x1   :  { %9 = vsyncpa [#allocation4], 0  ;;  %s647_s12 = smov [#allocation2]   ;;  %s599_s16 = scalar_lea.hbm %s727_s1, 6144 }
   0x2   :  { %s17_s13 = sshll.u32 %s647_s12, 4  ;;  %p600_p0 = scmp.ne.s32.totalorder %s727_s1, %s599_s16  ;;  %s18_s13 = int_to_ptr.vmem [resolvable:$true] %s17_s13 }
   0x3   :  { %p603_p1 = scmp.lt.u32.totalorder %s599_s16, %s727_s1 }
   0x5   :  { %p605_p2 = pnand %p603_p1, %p600_p0 }
   0x7   :  { %608 = shalt.err (!%p605_p2)
}
   0x8   :  { %s609_s21 = scalar_lea.vmem %s18_s13, 6144  ;;  %p614_p4 = scmp.lt.s32.totalorder %s18_s13, %s18_s13 }
   0x9   :  { %p610_p3 = scmp.ne.s32.totalorder %s18_s13, %s609_s21  ;;  %p615_p5 = scmp.lt.s32.totalorder %s609_s21, %s609_s21 }
   0xb   :  { %p616_p6 = por %p615_p5, %p614_p4 }
   0xd   :  { %p617_p7 = pnand %p616_p6, %p610_p3 }
   0xf   :  { %620 = shalt.err (!%p617_p7)
}
  0x10   :  { %s648_s22 = smov 128   ;;  %s649_s23 = smov 8  }
  0x11   :  { %23 = dma.hbm_to_vmem [thread:$0]  %s727_s1, 6144, %s18_s13, [#allocation3], %s648_s22, %s648_s22, %s649_s23  }
  0x12   :  { %643 = dma.done.wait [#allocation3], 6144  }
  0x13   :  { %644 = vsyncadd [#allocation3], 4294961152  ;;  %vm54_vm0 = vcmask 1043456   ;;  %vm41_vm1 = vcmask 31744   ;;  %v33_v0 = vld [vmem:[#allocation2] sm:$0xf] }
  0x14   :  { %v29_v1 = vld [vmem:[%s726_s0] sm:$0xff]  ;;  %v30_v2 = vld [vmem:[%s726_s0 + $0x8] sm:$0xff]  ;;  %447 = vmatprep.subr.msk.mxu0 %vm54_vm0, %v33_v0  ;;  %v31_v3 = vld [vmem:[%s726_s0 + $0x10] sm:$0xff]  ;;  %s650_s11 = smov [#allocation5]  }
  0x15   :  { %449 = vmatprep.mubr.msk.f32.mxu0 %vm41_vm1, %v29_v1  ;;  %v148_v4 = vld [vmem:[#allocation2 + $0x80] sm:$0xff]  ;;  %448 = vmatpush3.msk.msra.mxu0 %vm54_vm0, %v33_v0  ;;  %v149_v5 = vld [vmem:[#allocation2 + $0x88] sm:$0xff]  ;;  %v150_v6 = vld [vmem:[#allocation2 + $0x90] sm:$0xff]  ;;  %s380_s12 = sshll.u32 %s650_s11, 4  ;;  %s381_s12 = int_to_ptr.vmem [resolvable:$true] %s380_s12 }
  0x16   :  { %v151_v7 = vld [vmem:[#allocation2 + $0x98] sm:$0xff]  ;;  %450 = vmatmul.mubr.msk.f32.vlgmr.msra.gmra.mrb[0].mxu0 %vm41_vm1, %v30_v2  ;;  %v531_v8 = vpack.c.bf16 %v149_v5, %v148_v4  ;;  %v152_v11 = vld [vmem:[#allocation2 + $0xa0] sm:$0xff]  ;;  %v153_v12 = vld [vmem:[#allocation2 + $0xa8] sm:$0xff]  ;;  %s621_s13 = scalar_lea.vmem %s381_s12, 512  ;;  %p626_p9 = scmp.lt.s32.totalorder %s381_s12, %s381_s12 }
  0x17   :  { %v535_v9 = vpack.c.bf16 %v151_v7, %v150_v6  ;;  %452 = vmatprep.mubr.msk.f32.mxu0 %vm41_vm1, %v31_v3  ;;  %v32_v10 = vld [vmem:[%s726_s0 + $0x18] sm:$0xff]  ;;  %v539_v13 = vpack.c.bf16 %v153_v12, %v152_v11  ;;  %v154_v14 = vld [vmem:[#allocation2 + $0xb0] sm:$0xff]  ;;  %v156_v17 = vld [vmem:[#allocation2 + $0xc0] sm:$0xff]  ;;  %p622_p8 = scmp.ne.s32.totalorder %s381_s12, %s621_s13  ;;  %p627_p10 = scmp.lt.s32.totalorder %s621_s13, %s621_s13 }
  0x18   :  { %532 = vmatprep.subr.bf16.mxu1 %v531_v8  ;;  %v155_v15 = vld [vmem:[#allocation2 + $0xb8] sm:$0xff]  ;;  %v157_v18 = vld [vmem:[#allocation2 + $0xc8] sm:$0xff]  ;;  %v158_v20 = vld [vmem:[#allocation2 + $0xd0] sm:$0xff] }
  0x19   :  { %534 = vmatpush3.bf16.msra.mxu1 %v531_v8  ;;  %v543_v16 = vpack.c.bf16 %v155_v15, %v154_v14  ;;  %v547_v19 = vpack.c.bf16 %v157_v18, %v156_v17  ;;  %v159_v21 = vld [vmem:[#allocation2 + $0xd8] sm:$0xff]  ;;  %v160_v23 = vld [vmem:[#allocation2 + $0xe0] sm:$0xff]  ;;  %v161_v24 = vld [vmem:[#allocation2 + $0xe8] sm:$0xff]  ;;  %p628_p11 = por %p627_p10, %p626_p9 }
  0x1a   :  { %453 = vmatmul.mubr.msk.f32.gmra.mrb[2].mxu0 %vm41_vm1, %v32_v10  ;;  %536 = vmatprep.subr.bf16.mxu1 %v535_v9  ;;  %v551_v22 = vpack.c.bf16 %v159_v21, %v158_v20  ;;  %v555_v25 = vpack.c.bf16 %v161_v24, %v160_v23  ;;  %v162_v26 = vld [vmem:[#allocation2 + $0xf0] sm:$0xff]  ;;  %v163_v27 = vld [vmem:[#allocation2 + $0xf8] sm:$0xff]  ;;  %v262_v29 = vld [vmem:[#allocation2 + $0x100] sm:$0xff] }
  0x1b   :  { %v559_v28 = vpack.c.bf16 %v163_v27, %v162_v26  ;;  %v263_v30 = vld [vmem:[#allocation2 + $0x108] sm:$0xff]  ;;  %v264_v31 = vld [vmem:[#allocation2 + $0x110] sm:$0xff]  ;;  %v265_v33 = vld [vmem:[#allocation2 + $0x118] sm:$0xff]  ;;  %p629_p12 = pnand %p628_p11, %p622_p8 }
  0x1c   :  { %v563_v32 = vpack.c.bf16 %v263_v30, %v262_v29  ;;  %v567_v34 = vpack.c.bf16 %v265_v33, %v264_v31  ;;  %v266_v35 = vld [vmem:[#allocation2 + $0x120] sm:$0xff]  ;;  %v267_v36 = vld [vmem:[#allocation2 + $0x128] sm:$0xff]  ;;  %v268_v38 = vld [vmem:[#allocation2 + $0x130] sm:$0xff] }
  0x1d   :  { %538 = vmatpush3.bf16.msra.mxu1 %v535_v9  ;;  %v571_v37 = vpack.c.bf16 %v267_v36, %v266_v35  ;;  %v269_v39 = vld [vmem:[#allocation2 + $0x138] sm:$0xff]  ;;  %v270_v41 = vld [vmem:[#allocation2 + $0x140] sm:$0xff]  ;;  %v271_v42 = vld [vmem:[#allocation2 + $0x148] sm:$0xff] }
  0x1e   :  { %540 = vmatprep.subr.bf16.mxu1 %v539_v13  ;;  %564 = vmatprep.subr.bf16.mxu0 %v563_v32  ;;  %v575_v40 = vpack.c.bf16 %v269_v39, %v268_v38  ;;  %v579_v43 = vpack.c.bf16 %v271_v42, %v270_v41  ;;  %v272_v44 = vld [vmem:[#allocation2 + $0x150] sm:$0xff]  ;;  %v273_v45 = vld [vmem:[#allocation2 + $0x158] sm:$0xff]  ;;  %v274_v47 = vld [vmem:[#allocation2 + $0x160] sm:$0xff] }
  0x1f   :  { %566 = vmatpush3.bf16.msra.mxu0 %v563_v32  ;;  %v583_v46 = vpack.c.bf16 %v273_v45, %v272_v44  ;;  %v275_v48 = vld [vmem:[#allocation2 + $0x168] sm:$0xff]  ;;  %v392_v50 = vld [vmem:[%s728_s2] ss:$0 sm:$0xff]  ;;  %v276_v63 = vld [vmem:[#allocation2 + $0x170] sm:$0xff] }
  0x20   :  { %568 = vmatprep.subr.bf16.mxu0 %v567_v34  ;;  %v587_v49 = vpack.c.bf16 %v275_v48, %v274_v47  ;;  %v277_v0 = vld [vmem:[#allocation2 + $0x178] sm:$0xff]  ;;  %v399_v2 = vld [vmem:[%s728_s2 + $0x1] ss:$0 sm:$0xff]  ;;  %v401_v15 = vld [vmem:[%s728_s2 + $0x2] ss:$0 sm:$0xff] }
  0x21   :  { %542 = vmatpush3.bf16.msra.mxu1 %v539_v13  ;;  %v591_v1 = vpack.c.bf16 %v277_v0, %v276_v63 }
  0x22   :  { %544 = vmatprep.subr.bf16.mxu1 %v543_v16 }
  0x23   :  { %570 = vmatpush3.bf16.msra.mxu0 %v567_v34 }
  0x24   :  { %572 = vmatprep.subr.bf16.mxu0 %v571_v37 }
  0x25   :  { %546 = vmatpush3.bf16.msra.mxu1 %v543_v16 }
  0x26   :  { %548 = vmatprep.subr.bf16.mxu1 %v547_v19 }
  0x27   :  { %574 = vmatpush3.bf16.msra.mxu0 %v571_v37 }
  0x28   :  { %576 = vmatprep.subr.bf16.mxu0 %v575_v40 }
  0x29   :  { %550 = vmatpush3.bf16.msra.mxu1 %v547_v19 }
  0x2a   :  { %552 = vmatprep.subr.bf16.mxu1 %v551_v22 }
  0x2b   :  { %578 = vmatpush3.bf16.msra.mxu0 %v575_v40 }
  0x2c   :  { %580 = vmatprep.subr.bf16.mxu0 %v579_v43 }
  0x2d   :  { %554 = vmatpush3.bf16.msra.mxu1 %v551_v22 }
  0x2e   :  { %556 = vmatprep.subr.bf16.mxu1 %v555_v25 }
  0x2f   :  { %582 = vmatpush3.bf16.msra.mxu0 %v579_v43 }
  0x30   :  { %584 = vmatprep.subr.bf16.mxu0 %v583_v46 }
  0x31   :  { %558 = vmatpush3.bf16.msra.mxu1 %v555_v25 }
  0x32   :  { %560 = vmatprep.subr.bf16.mxu1 %v559_v28 }
  0x33   :  { %586 = vmatpush3.bf16.msra.mxu0 %v583_v46 }
  0x34   :  { %588 = vmatprep.subr.bf16.mxu0 %v587_v49 }
  0x35   :  { %562 = vmatpush3.bf16.msra.mxu1 %v559_v28 }
  0x37   :  { %590 = vmatpush3.bf16.msra.mxu0 %v587_v49 }
  0x38   :  { %592 = vmatprep.subr.bf16.mxu0 %v591_v1 }
  0x3b   :  { %594 = vmatpush3.bf16.msra.mxu0 %v591_v1 }
  0xe9   :  { %v451_v51 = vpop.f32.mrb[0].mxu0 }
  0xea   :  { %v130_v52 = vadd.f32 %v451_v51, %v392_v50  ;;  %v124_v53 = vpop.f32.mrb[1].mxu0 }
  0xeb   :  { %v125_v54 = vadd.f32 %v392_v50, %v124_v53 }
  0xec   :  { %v144_v57 = vmax.f32 %v130_v52, 0.0 }
  0xed   :  { %v454_v55 = vpop.f32.mrb[2].mxu0  ;;  %v143_v56 = vmax.f32 %v125_v54, 0.0 }
  0xee   :  { %v140_v58 = vadd.f32 %v454_v55, %v392_v50  ;;  %v134_v59 = vpop.f32.mrb[3].mxu0 }
  0xef   :  { %v135_v60 = vadd.f32 %v392_v50, %v134_v59  ;;  %487 = vmatprep.mubr.f32.mxu1 %v143_v56 }
  0xf0   :  { %488 = vmatmul.mubr.f32.vlgmr.msra.gmra.mrb[0].mxu1 %v144_v57  ;;  %v146_v62 = vmax.f32 %v140_v58, 0.0 }
  0xf1   :  { %v145_v61 = vmax.f32 %v135_v60, 0.0 }
  0xf3   :  { %490 = vmatprep.mubr.f32.mxu1 %v145_v61 }
  0xf4   :  { %491 = vmatmul.mubr.f32.gmra.mrb[2].mxu1 %v146_v62 }
 0x1c3   :  { %v489_v3 = vpop.f32.mrb[0].mxu1 }
 0x1c4   :  { %v244_v4 = vadd.f32 %v489_v3, %v399_v2  ;;  %v238_v5 = vpop.f32.mrb[1].mxu1 }
 0x1c5   :  { %v239_v6 = vadd.f32 %v399_v2, %v238_v5 }
 0x1c6   :  { %v258_v9 = vmax.f32 %v244_v4, 0.0 }
 0x1c7   :  { %v257_v7 = vmax.f32 %v239_v6, 0.0  ;;  %v492_v8 = vpop.f32.mrb[2].mxu1 }
 0x1c8   :  { %v254_v10 = vadd.f32 %v492_v8, %v399_v2  ;;  %v248_v11 = vpop.f32.mrb[3].mxu1 }
 0x1c9   :  { %v249_v12 = vadd.f32 %v399_v2, %v248_v11  ;;  %525 = vmatprep.mubr.f32.mxu0 %v257_v7 }
 0x1ca   :  { %526 = vmatmul.mubr.f32.vlgmr.msra.gmra.mrb[4].mxu0 %v258_v9  ;;  %v260_v14 = vmax.f32 %v254_v10, 0.0 }
 0x1cb   :  { %v259_v13 = vmax.f32 %v249_v12, 0.0 }
 0x1cd   :  { %528 = vmatprep.mubr.f32.mxu0 %v259_v13 }
 0x1ce   :  { %529 = vmatmul.mubr.f32.gmra.mrb[6].mxu0 %v260_v14 }
 0x29d   :  { %v527_v16 = vpop.f32.mrb[4].mxu0 }
 0x29e   :  { %v358_v17 = vadd.f32 %v527_v16, %v401_v15  ;;  %v352_v18 = vpop.f32.mrb[5].mxu0 }
 0x29f   :  { %v353_v19 = vadd.f32 %v401_v15, %v352_v18 }
 0x2a0   :  { %372 = vst [vmem:[#allocation5 + $0x8] sm:$0xff] %v358_v17 }
 0x2a1   :  { %371 = vst [vmem:[#allocation5] sm:$0xff] %v353_v19  ;;  %v530_v20 = vpop.f32.mrb[6].mxu0 }
 0x2a2   :  { %v368_v21 = vadd.f32 %v530_v20, %v401_v15  ;;  %v362_v22 = vpop.f32.mrb[7].mxu0 }
 0x2a3   :  { %v363_v23 = vadd.f32 %v401_v15, %v362_v22 }
 0x2a4   :  { %374 = vst [vmem:[#allocation5 + $0x18] sm:$0xff] %v368_v21 }
 0x2a5   :  { %373 = vst [vmem:[#allocation5 + $0x10] sm:$0xff] %v363_v23 }
 0x2a6   :  { %632 = shalt.err (!%p629_p12)
}
 0x2a7   :  { %s633_s15 = scalar_lea.hbm %s729_s3, 512 }
 0x2a8   :  { %p634_p13 = scmp.ne.s32.totalorder %s729_s3, %s633_s15  ;;  %p637_p0 = scmp.lt.u32.totalorder %s633_s15, %s729_s3 }
 0x2aa   :  { %p639_p1 = pnand %p637_p0, %p634_p13 }
 0x2ac   :  { %642 = shalt.err (!%p639_p1)
}
 0x2ad   :  { %386 = dma.vmem_to_hbm [thread:$0]  %s381_s12, 512, %s729_s3, [#allocation4], %s648_s22, %s648_s22, %s649_s23  }
 0x2ae   :  { %645 = dma.done.wait [#allocation4], 512  }
 0x2af   :  { %646 = vsyncadd [#allocation4], 4294966784 }
 0x2b0   :  { %390 = vsyncpa [#allocation3], 1 }
 0x2b1   :  { %391 = vsyncpa [#allocation4], 1 }

</bundles_post_ra>
